<compile_context>
chip_gen: v5e
topology: v5e:2x2
jax: 0.10.0
libtpu: 0.0.40
codegen_flags: <defaults>
</compile_context>

<pallas_src>
import functools
import math

import jax
import jax.numpy as jnp
from jax.experimental import pallas as pl
from jax.experimental.pallas import tpu as pltpu

LANE = 128
SUBLANE = 8


def _round_up(v, m):
    return (v + m - 1) // m * m


def _gnn_kernel(adj_ref, mw1_ref, dinv_row_ref, batch_ref,
                b1_ref, w2_ref, b2_ref, invc_ref, wl_ref, bl_ref,
                out_ref, mw2_ref, pool_ref):
    """grid = (phase, row_tile).

    phase 0, tile i : prop1 = D^-1/2_rows * (A_rows @ mw1);  H1 = relu(prop1 + b1);
                      mw2_rows = D^-1/2_rows * (H1 @ W2)   (written to mw2 scratch)
    phase 1, tile i : prop2 = D^-1/2_rows * (A_rows @ mw2);  H2 = relu(prop2 + b2);
                      pool += onehot(batch_rows) @ H2
    last step       : out = (pool * 1/|graph|) @ Wl + bl     (lane-dense store)

    adj_ref  : [tm, Np]  int8  raw adjacency counts for this tile's rows
    mw1_ref  : [Np, Hp]  bf16  precomputed D^-1/2 * (X @ W1)  (resident)
    dinv_row : [tm, 1]   f32   D^-1/2 for this tile's rows
    batch    : [1, tm]   i32   graph id per node of this tile (padded nodes -> g_pad)
    w2/b*    : padded weights (bf16) / biases (f32)
    invc     : [Gp, 1]   f32   1 / |graph|
    out      : [Gp, 128] f32   lane-dense logits (first 2 columns valid)
    scratch  : mw2 [Np,Hp] bf16, pool [Gp,Hp] f32 accumulator
    """
    p = pl.program_id(0)          # 0 -> conv1, 1 -> conv2 + pool + classifier
    i = pl.program_id(1)          # node-row tile
    nt = pl.num_programs(1)
    tm = adj_ref.shape[0]
    g_pad = pool_ref.shape[0]

    # int8 -> bf16 upcast after the auto-DMA (VPU work, hidden under the MXU slot).
    adj = adj_ref[...].astype(jnp.bfloat16)

    @pl.when((p == 0) & (i == 0))
    def _():
        pool_ref[...] = jnp.zeros_like(pool_ref)

    # ---- phase 0: GCN layer 1 for this tile + fold the (H1 @ W2) staging in ----------
    @pl.when(p == 0)
    def _():
        prop = jnp.dot(adj, mw1_ref[...], preferred_element_type=jnp.float32)
        prop = dinv_row_ref[...] * prop                          # [tm, Hp] f32
        h1 = jnp.maximum(prop + b1_ref[...], 0.0).astype(jnp.bfloat16)   # dropout1 = id
        m2 = jnp.dot(h1, w2_ref[...], preferred_element_type=jnp.float32)
        m2 = dinv_row_ref[...] * m2                              # [tm, Hp] f32
        row0 = pl.multiple_of(i * tm, tm)
        mw2_ref[pl.ds(row0, tm), :] = m2.astype(mw2_ref.dtype)

    # ---- phase 1: GCN layer 2 propagation + on-the-fly mean-pool accumulation --------
    @pl.when(p == 1)
    def _():
        prop = jnp.dot(adj, mw2_ref[...], preferred_element_type=jnp.float32)
        prop = dinv_row_ref[...] * prop                          # [tm, Hp] f32
        h2 = jnp.maximum(prop + b2_ref[...], 0.0).astype(jnp.bfloat16)   # dropout2 = id
        # One-hot pooling rows built on the fly (P never materialized in HBM).  Padded
        # nodes carry batch id == g_pad, outside the iota range -> never match.
        eq = (jax.lax.broadcasted_iota(jnp.int32, (g_pad, tm), 0) == batch_ref[...])
        onehot = jnp.where(eq, 1.0, 0.0).astype(jnp.bfloat16)
        pool_ref[...] += jnp.dot(onehot, h2, preferred_element_type=jnp.float32)

    # ---- finalize: mean pool, classifier, lane-dense store ---------------------------
    @pl.when((p == 1) & (i == nt - 1))
    def _():
        pooled = (pool_ref[...] * invc_ref[...]).astype(jnp.bfloat16)    # dropout3 = id
        logits = jnp.dot(pooled, wl_ref[...], preferred_element_type=jnp.float32)
        out_ref[...] = (logits + bl_ref[...]).astype(out_ref.dtype)


@functools.partial(jax.jit, static_argnames=("num_graphs", "tile_rows"))
def gnn_forward(x, edge_index, batch, params, num_graphs, tile_rows=128):
    """Build raw int8 adjacency / degree vectors (no A_hat or P in HBM), hoist the
    X @ W1 staging to XLA, pad to TPU-friendly shapes and run the fused Pallas kernel."""
    w1, b1, w2, b2, wl, bl = params
    n, f = x.shape
    h = w1.shape[1]
    assert tile_rows % SUBLANE == 0

    n_pad = _round_up(n, math.lcm(tile_rows, LANE))
    h_pad = _round_up(h, LANE)
    o_pad = LANE                                  # lane-dense classifier output
    g_pad = _round_up(num_graphs, SUBLANE)
    nt = n_pad // tile_rows

    # ---- raw adjacency with PyG semantics (scatter-add + add_remaining_self_loops) ----
    src, dst = edge_index[0], edge_index[1]
    adj = jnp.zeros((n_pad, n_pad), jnp.float32).at[dst, src].add(1.0)
    ids = jnp.arange(n_pad)
    diag = adj[ids, ids]
    need_loop = (ids < n) & (diag == 0.0)
    adj = adj.at[ids, ids].add(need_loop.astype(jnp.float32))
    deg = jnp.sum(adj, axis=1)
    dinv = jnp.where(deg > 0.0, jax.lax.rsqrt(deg), 0.0).reshape(n_pad, 1)
    adj_i8 = adj.astype(jnp.int8)                 # counts are small ints -> exact in int8

    # ---- hoisted layer-1 staging: mw1 = D^-1/2 * (X @ W1) ----------------------------
    xw = x.astype(jnp.float32) @ w1.astype(jnp.float32)                   # [n, h]
    xw_p = jnp.zeros((n_pad, h_pad), jnp.float32).at[:n, :h].set(xw)
    mw1 = (dinv * xw_p).astype(jnp.bfloat16)

    # ---- pooling metadata (vectors only, no [G, N] matrix) ----------------------------
    # Padded nodes get id g_pad -> never matched by the g_pad-wide one-hot iota.
    batch_p = jnp.full((1, n_pad), g_pad, jnp.int32).at[0, :n].set(batch.astype(jnp.int32))
    counts = jnp.zeros((g_pad,), jnp.float32).at[batch].add(1.0)
    inv_counts = jnp.where(counts > 0.0, 1.0 / counts, 1.0).reshape(g_pad, 1)

    # ---- padded / bf16 operands --------------------------------------------------------
    def pad2(a, rows, cols, dtype):
        return jnp.zeros((rows, cols), dtype).at[:a.shape[0], :a.shape[1]].set(
            a.astype(dtype))

    b1_p = pad2(b1, 1, h_pad, jnp.float32)
    w2_p = pad2(w2, h_pad, h_pad, jnp.bfloat16)
    b2_p = pad2(b2, 1, h_pad, jnp.float32)
    wl_p = pad2(wl, h_pad, o_pad, jnp.bfloat16)
    bl_p = pad2(bl, 1, o_pad, jnp.float32)

    def _full(rows, cols):
        return pl.BlockSpec((rows, cols), lambda p, i: (0, 0))

    flops = 2 * (2 * n_pad * n_pad * h_pad        # A @ M (two layers)
                 + n_pad * h_pad * h_pad          # H1 @ W2 (per-tile, total same)
                 + g_pad * n_pad * h_pad          # pooling matmul
                 + g_pad * h_pad * o_pad)         # classifier
    bytes_accessed = (2 * n_pad * n_pad * 1       # int8 adjacency streamed in both phases
                      + n_pad * h_pad * 2         # mw1
                      + (h_pad + o_pad) * h_pad * 2
                      + 3 * n_pad * 4 + g_pad * o_pad * 4)

    # ---- explicit VMEM budget: residents + double-buffered streams + scratch + slack --
    resident_bytes = 2 * (n_pad * h_pad * 2          # mw1 (default double-buffered)
                          + h_pad * h_pad * 2        # W2
                          + h_pad * o_pad * 2        # Wl
                          + (2 * h_pad + o_pad) * 4  # b1, b2, bl
                          + g_pad * 4)               # 1/|graph|
    stream_bytes = 2 * (tile_rows * n_pad * 1        # int8 adjacency tile, double-buffered
                        + tile_rows * 4 + tile_rows * 4)
    scratch_bytes = n_pad * h_pad * 2 + g_pad * h_pad * 4
    out_bytes = 2 * g_pad * o_pad * 4
    vmem_limit = min(resident_bytes + stream_bytes + scratch_bytes + out_bytes
                     + (8 << 20),                    # compiler internal-scratch headroom
                     56 * 1024 * 1024)               # v7x-safe (< 64 MiB per TC)

    out = pl.pallas_call(
        _gnn_kernel,
        out_shape=jax.ShapeDtypeStruct((g_pad, o_pad), jnp.float32),
        grid=(2, nt),
        in_specs=[
            pl.BlockSpec((tile_rows, n_pad), lambda p, i: (i, 0)),   # int8 adjacency rows
            _full(n_pad, h_pad),                                     # mw1 = D^-1/2 (X W1)
            pl.BlockSpec((tile_rows, 1), lambda p, i: (i, 0)),       # D^-1/2 (tile rows)
            pl.BlockSpec((1, tile_rows), lambda p, i: (0, i)),       # graph ids (tile)
            _full(1, h_pad),                                         # b1
            _full(h_pad, h_pad), _full(1, h_pad),                    # W2, b2
            _full(g_pad, 1),                                         # 1 / |graph|
            _full(h_pad, o_pad), _full(1, o_pad),                    # Wl, bl
        ],
        out_specs=pl.BlockSpec((g_pad, o_pad), lambda p, i: (0, 0)),
        scratch_shapes=[
            pltpu.VMEM((n_pad, h_pad), jnp.bfloat16),   # mw2 = D^-1/2 (H1 W2), col-scaled
            pltpu.VMEM((g_pad, h_pad), jnp.float32),    # pooled-sum accumulator
        ],
        compiler_params=pltpu.CompilerParams(
            # Row-tile axis must stay "arbitrary": phase 1 reads the full mw2 scratch
            # written by all phase-0 tiles and the pool accumulator is shared across tiles.
            dimension_semantics=("arbitrary", "arbitrary"),
            vmem_limit_bytes=vmem_limit,
        ),
        cost_estimate=pl.CostEstimate(flops=flops, transcendentals=0,
                                      bytes_accessed=bytes_accessed),
    )(adj_i8, mw1, dinv, batch_p, b1_p, w2_p, b2_p, inv_counts, wl_p, bl_p)

    return out[:num_graphs, :2]


def _reference_forward(x, edge_index, batch, params, num_graphs):
    """Pure-JAX f32 reference with identical adjacency / pooling semantics."""
    w1, b1, w2, b2, wl, bl = params
    n = x.shape[0]
    src, dst = edge_index[0], edge_index[1]
    adj = jnp.zeros((n, n), jnp.float32).at[dst, src].add(1.0)
    ids = jnp.arange(n)
    diag = adj[ids, ids]
    adj = adj.at[ids, ids].add(jnp.where(diag == 0.0, 1.0, 0.0))
    deg = adj.sum(axis=1)
    dinv = jnp.where(deg > 0.0, jax.lax.rsqrt(deg), 0.0)
    a_hat = dinv[:, None] * adj * dinv[None, :]
    h = jnp.maximum(a_hat @ (x @ w1) + b1, 0.0)
    h = jnp.maximum(a_hat @ (h @ w2) + b2, 0.0)
    onehot = (batch[None, :] == jnp.arange(num_graphs)[:, None]).astype(jnp.float32)
    pooled = (onehot @ h) / jnp.maximum(onehot.sum(axis=1, keepdims=True), 1.0)
    return pooled @ wl + bl


def init_params(key, num_node_features, hidden_channels):
    """Deterministic synthetic parameter init (Glorot-ish scaling)."""
    k1, k2, k3 = jax.random.split(key, 3)
    w1 = jax.random.normal(k1, (num_node_features, hidden_channels), jnp.float32)
    w1 = w1 * (1.0 / jnp.sqrt(jnp.float32(num_node_features)))
    b1 = jnp.zeros((1, hidden_channels), jnp.float32)
    w2 = jax.random.normal(k2, (hidden_channels, hidden_channels), jnp.float32)
    w2 = w2 * (1.0 / jnp.sqrt(jnp.float32(hidden_channels)))
    b2 = jnp.zeros((1, hidden_channels), jnp.float32)
    wl = jax.random.normal(k3, (hidden_channels, 2), jnp.float32)
    wl = wl * (1.0 / jnp.sqrt(jnp.float32(hidden_channels)))
    bl = jnp.zeros((1, 2), jnp.float32)
    return (w1, b1, w2, b2, wl, bl)


if __name__ == "__main__":
    key = jax.random.PRNGKey(0)
    kx, ke1, ke2 = jax.random.split(key, 3)

    num_nodes = 200            # pads to 256 -> exercises 2 row tiles of 128
    num_node_features = 16
    hidden_channels = 32
    num_graphs = 2
    num_edge_pairs = 200

    x = jax.random.normal(kx, (num_nodes, num_node_features), jnp.float32)

    src = jax.random.randint(ke1, (num_edge_pairs,), 0, num_nodes, dtype=jnp.int32)
    dst = jax.random.randint(ke2, (num_edge_pairs,), 0, num_nodes, dtype=jnp.int32)
    edge_index = jnp.stack([jnp.concatenate([src, dst]),
                            jnp.concatenate([dst, src])], axis=0)

    batch = jnp.concatenate([jnp.zeros((num_nodes // 2,), jnp.int32),
                             jnp.ones((num_nodes - num_nodes // 2,), jnp.int32)])

    params = init_params(jax.random.PRNGKey(0), num_node_features, hidden_channels)

    out = gnn_forward(x, edge_index, batch, params, num_graphs)
    out = jax.block_until_ready(out)

    ref = _reference_forward(x, edge_index, batch, params, num_graphs)
    assert out.shape == (num_graphs, 2)
    assert bool(jnp.all(jnp.isfinite(out)))
    # bf16 MXU operands with f32 accumulation -> loose tolerance vs f32 reference.
    assert bool(jnp.allclose(out, ref, rtol=0.1, atol=0.1))
    print("KERNEL_OK")
</pallas_src>

<mosaic_0001>
module attributes {stable_mosaic.version = 11 : i64} {
  func.func @_gnn_kernel(%arg0: i32, %arg1: i32, %arg2: memref<128x256xi8, #tpu.memory_space<vmem>>, %arg3: memref<256x128xbf16, #tpu.memory_space<vmem>>, %arg4: memref<128x1xf32, #tpu.memory_space<vmem>>, %arg5: memref<1x128xi32, #tpu.memory_space<vmem>>, %arg6: memref<1x128xf32, #tpu.memory_space<vmem>>, %arg7: memref<128x128xbf16, #tpu.memory_space<vmem>>, %arg8: memref<1x128xf32, #tpu.memory_space<vmem>>, %arg9: memref<8x1xf32, #tpu.memory_space<vmem>>, %arg10: memref<128x128xbf16, #tpu.memory_space<vmem>>, %arg11: memref<1x128xf32, #tpu.memory_space<vmem>>, %arg12: memref<8x128xf32, #tpu.memory_space<vmem>>, %arg13: memref<256x128xbf16, #tpu.memory_space<vmem>>, %arg14: memref<8x128xf32, #tpu.memory_space<vmem>>) attributes {dimension_semantics = [#tpu.dimension_semantics<arbitrary>, #tpu.dimension_semantics<arbitrary>], iteration_bounds = array<i64: 2, 2>, scalar_prefetch = 0 : i64, scratch_operands = 2 : i64, tpu.core_type = #tpu.core_type<tc>, window_params = [{transform_indices = @transform_0, window_bounds = array<i64: 128, 256>}, {pipeline_mode = #tpu.pipeline_mode<synchronous>, transform_indices = @transform_1, window_bounds = array<i64: 256, 128>}, {transform_indices = @transform_2, window_bounds = array<i64: 128, 1>}, {transform_indices = @transform_3, window_bounds = array<i64: 1, 128>}, {pipeline_mode = #tpu.pipeline_mode<synchronous>, transform_indices = @transform_4, window_bounds = array<i64: 1, 128>}, {pipeline_mode = #tpu.pipeline_mode<synchronous>, transform_indices = @transform_5, window_bounds = array<i64: 128, 128>}, {pipeline_mode = #tpu.pipeline_mode<synchronous>, transform_indices = @transform_6, window_bounds = array<i64: 1, 128>}, {pipeline_mode = #tpu.pipeline_mode<synchronous>, transform_indices = @transform_7, window_bounds = array<i64: 8, 1>}, {pipeline_mode = #tpu.pipeline_mode<synchronous>, transform_indices = @transform_8, window_bounds = array<i64: 128, 128>}, {pipeline_mode = #tpu.pipeline_mode<synchronous>, transform_indices = @transform_9, window_bounds = array<i64: 1, 128>}, {pipeline_mode = #tpu.pipeline_mode<synchronous>, transform_indices = @transform_10, window_bounds = array<i64: 8, 128>}]} {
    %c0 = arith.constant 0 : index
    %c0_0 = arith.constant 0 : index
    %0 = vector.load %arg2[%c0, %c0_0] : memref<128x256xi8, #tpu.memory_space<vmem>>, vector<128x256xi8>
    %1 = arith.sitofp %0 : vector<128x256xi8> to vector<128x256xbf16>
    %c0_i32 = arith.constant 0 : i32
    %2 = arith.cmpi eq, %arg0, %c0_i32 : i32
    %c0_i32_1 = arith.constant 0 : i32
    %3 = arith.cmpi eq, %arg1, %c0_i32_1 : i32
    %4 = arith.andi %2, %3 : i1
    %5 = arith.extui %4 : i1 to i32
    %c0_i32_2 = arith.constant 0 : i32
    %6 = arith.cmpi ne, %5, %c0_i32_2 : i32
    scf.if %6 {
      %cst = arith.constant 0.000000e+00 : f32
      %18 = vector.broadcast %cst : f32 to vector<8x128xf32>
      %c0_9 = arith.constant 0 : index
      %c0_10 = arith.constant 0 : index
      %19 = vector.load %arg14[%c0_9, %c0_10] : memref<8x128xf32, #tpu.memory_space<vmem>>, vector<8x128xf32>
      tpu.vector_store %arg14[%c0_9, %c0_10], %18 {strides = array<i32>} : memref<8x128xf32, #tpu.memory_space<vmem>>, vector<8x128xf32>,
    } else {
    }
    %c0_i32_3 = arith.constant 0 : i32
    %7 = arith.cmpi eq, %arg0, %c0_i32_3 : i32
    %8 = arith.extui %7 : i1 to i32
    %c0_i32_4 = arith.constant 0 : i32
    %9 = arith.cmpi ne, %8, %c0_i32_4 : i32
    scf.if %9 {
      %c0_9 = arith.constant 0 : index
      %c0_10 = arith.constant 0 : index
      %18 = vector.load %arg3[%c0_9, %c0_10] : memref<256x128xbf16, #tpu.memory_space<vmem>>, vector<256x128xbf16>
      %cst = arith.constant dense<0.000000e+00> : vector<128x128xf32>
      %19 = tpu.matmul %1, %18, %cst {dimension_numbers = #tpu.dot_dimension_numbers<[1], [0], [0], [1], [0, 0, 1, 1], [], []>} : vector<128x256xbf16>, vector<256x128xbf16>, vector<128x128xf32> -> vector<128x128xf32>
      %c0_11 = arith.constant 0 : index
      %c0_12 = arith.constant 0 : index
      %20 = vector.load %arg4[%c0_11, %c0_12] : memref<128x1xf32, #tpu.memory_space<vmem>>, vector<128x1xf32>
      %21 = vector.broadcast %20 : vector<128x1xf32> to vector<128x128xf32>
      %22 = arith.mulf %21, %19 : vector<128x128xf32>
      %c0_13 = arith.constant 0 : index
      %c0_14 = arith.constant 0 : index
      %23 = vector.load %arg6[%c0_13, %c0_14] : memref<1x128xf32, #tpu.memory_space<vmem>>, vector<1x128xf32>
      %24 = vector.broadcast %23 : vector<1x128xf32> to vector<128x128xf32>
      %25 = arith.addf %22, %24 : vector<128x128xf32>
      %cst_15 = arith.constant 0.000000e+00 : f32
      %26 = vector.broadcast %cst_15 : f32 to vector<128x128xf32>
      %27 = arith.maximumf %25, %26 : vector<128x128xf32>
      %28 = arith.truncf %27 : vector<128x128xf32> to vector<128x128xbf16>
      %c0_16 = arith.constant 0 : index
      %c0_17 = arith.constant 0 : index
      %29 = vector.load %arg7[%c0_16, %c0_17] : memref<128x128xbf16, #tpu.memory_space<vmem>>, vector<128x128xbf16>
      %cst_18 = arith.constant dense<0.000000e+00> : vector<128x128xf32>
      %30 = tpu.matmul %28, %29, %cst_18 {dimension_numbers = #tpu.dot_dimension_numbers<[1], [0], [0], [1], [0, 0, 1, 1], [], []>} : vector<128x128xbf16>, vector<128x128xbf16>, vector<128x128xf32> -> vector<128x128xf32>
      %c0_19 = arith.constant 0 : index
      %c0_20 = arith.constant 0 : index
      %31 = vector.load %arg4[%c0_19, %c0_20] : memref<128x1xf32, #tpu.memory_space<vmem>>, vector<128x1xf32>
      %32 = vector.broadcast %31 : vector<128x1xf32> to vector<128x128xf32>
      %33 = arith.mulf %32, %30 : vector<128x128xf32>
      %c128_i32 = arith.constant 128 : i32
      %34 = arith.muli %arg1, %c128_i32 : i32
      %35 = tpu.assume_multiple %34, 128 : i32
      %36 = arith.truncf %33 : vector<128x128xf32> to vector<128x128xbf16>
      %37 = arith.index_cast %35 : i32 to index
      %c0_21 = arith.constant 0 : index
      %38 = vector.load %arg13[%37, %c0_21] : memref<256x128xbf16, #tpu.memory_space<vmem>>, vector<128x128xbf16>
      tpu.vector_store %arg13[%37, %c0_21], %36 {strides = array<i32>} : memref<256x128xbf16, #tpu.memory_space<vmem>>, vector<128x128xbf16>,
    } else {
    }
    %c1_i32 = arith.constant 1 : i32
    %10 = arith.cmpi eq, %arg0, %c1_i32 : i32
    %11 = arith.extui %10 : i1 to i32
    %c0_i32_5 = arith.constant 0 : i32
    %12 = arith.cmpi ne, %11, %c0_i32_5 : i32
    scf.if %12 {
      %c0_9 = arith.constant 0 : index
      %c0_10 = arith.constant 0 : index
      %18 = vector.load %arg13[%c0_9, %c0_10] : memref<256x128xbf16, #tpu.memory_space<vmem>>, vector<256x128xbf16>
      %cst = arith.constant dense<0.000000e+00> : vector<128x128xf32>
      %19 = tpu.matmul %1, %18, %cst {dimension_numbers = #tpu.dot_dimension_numbers<[1], [0], [0], [1], [0, 0, 1, 1], [], []>} : vector<128x256xbf16>, vector<256x128xbf16>, vector<128x128xf32> -> vector<128x128xf32>
      %c0_11 = arith.constant 0 : index
      %c0_12 = arith.constant 0 : index
      %20 = vector.load %arg4[%c0_11, %c0_12] : memref<128x1xf32, #tpu.memory_space<vmem>>, vector<128x1xf32>
      %21 = vector.broadcast %20 : vector<128x1xf32> to vector<128x128xf32>
      %22 = arith.mulf %21, %19 : vector<128x128xf32>
      %c0_13 = arith.constant 0 : index
      %c0_14 = arith.constant 0 : index
      %23 = vector.load %arg8[%c0_13, %c0_14] : memref<1x128xf32, #tpu.memory_space<vmem>>, vector<1x128xf32>
      %24 = vector.broadcast %23 : vector<1x128xf32> to vector<128x128xf32>
      %25 = arith.addf %22, %24 : vector<128x128xf32>
      %cst_15 = arith.constant 0.000000e+00 : f32
      %26 = vector.broadcast %cst_15 : f32 to vector<128x128xf32>
      %27 = arith.maximumf %25, %26 : vector<128x128xf32>
      %28 = arith.truncf %27 : vector<128x128xf32> to vector<128x128xbf16>
      %29 = tpu.iota {dimensions = array<i32: 0>} : vector<8x128xi32>
      %c0_16 = arith.constant 0 : index
      %c0_17 = arith.constant 0 : index
      %30 = vector.load %arg5[%c0_16, %c0_17] : memref<1x128xi32, #tpu.memory_space<vmem>>, vector<1x128xi32>
      %31 = vector.broadcast %30 : vector<1x128xi32> to vector<8x128xi32>
      %32 = arith.cmpi eq, %29, %31 : vector<8x128xi32>
      %cst_18 = arith.constant 1.000000e+00 : f32
      %cst_19 = arith.constant 0.000000e+00 : f32
      %33 = vector.broadcast %cst_18 : f32 to vector<8x128xf32>
      %34 = vector.broadcast %cst_19 : f32 to vector<8x128xf32>
      %35 = arith.select %32, %33, %34 : vector<8x128xi1>, vector<8x128xf32>
      %36 = arith.truncf %35 : vector<8x128xf32> to vector<8x128xbf16>
      %c0_20 = arith.constant 0 : index
      %c0_21 = arith.constant 0 : index
      %37 = vector.load %arg14[%c0_20, %c0_21] : memref<8x128xf32, #tpu.memory_space<vmem>>, vector<8x128xf32>
      %cst_22 = arith.constant dense<0.000000e+00> : vector<8x128xf32>
      %38 = tpu.matmul %36, %28, %cst_22 {dimension_numbers = #tpu.dot_dimension_numbers<[1], [0], [0], [1], [0, 0, 1, 1], [], []>} : vector<8x128xbf16>, vector<128x128xbf16>, vector<8x128xf32> -> vector<8x128xf32>
      %39 = arith.addf %37, %38 : vector<8x128xf32>
      %c0_23 = arith.constant 0 : index
      %c0_24 = arith.constant 0 : index
      %40 = vector.load %arg14[%c0_23, %c0_24] : memref<8x128xf32, #tpu.memory_space<vmem>>, vector<8x128xf32>
      tpu.vector_store %arg14[%c0_23, %c0_24], %39 {strides = array<i32>} : memref<8x128xf32, #tpu.memory_space<vmem>>, vector<8x128xf32>,
    } else {
    }
    %c1_i32_6 = arith.constant 1 : i32
    %13 = arith.cmpi eq, %arg0, %c1_i32_6 : i32
    %c1_i32_7 = arith.constant 1 : i32
    %14 = arith.cmpi eq, %arg1, %c1_i32_7 : i32
    %15 = arith.andi %13, %14 : i1
    %16 = arith.extui %15 : i1 to i32
    %c0_i32_8 = arith.constant 0 : i32
    %17 = arith.cmpi ne, %16, %c0_i32_8 : i32
    scf.if %17 {
      %c0_9 = arith.constant 0 : index
      %c0_10 = arith.constant 0 : index
      %18 = vector.load %arg14[%c0_9, %c0_10] : memref<8x128xf32, #tpu.memory_space<vmem>>, vector<8x128xf32>
      %c0_11 = arith.constant 0 : index
      %c0_12 = arith.constant 0 : index
      %19 = vector.load %arg9[%c0_11, %c0_12] : memref<8x1xf32, #tpu.memory_space<vmem>>, vector<8x1xf32>
      %20 = vector.broadcast %19 : vector<8x1xf32> to vector<8x128xf32>
      %21 = arith.mulf %18, %20 : vector<8x128xf32>
      %22 = arith.truncf %21 : vector<8x128xf32> to vector<8x128xbf16>
      %c0_13 = arith.constant 0 : index
      %c0_14 = arith.constant 0 : index
      %23 = vector.load %arg10[%c0_13, %c0_14] : memref<128x128xbf16, #tpu.memory_space<vmem>>, vector<128x128xbf16>
      %cst = arith.constant dense<0.000000e+00> : vector<8x128xf32>
      %24 = tpu.matmul %22, %23, %cst {dimension_numbers = #tpu.dot_dimension_numbers<[1], [0], [0], [1], [0, 0, 1, 1], [], []>} : vector<8x128xbf16>, vector<128x128xbf16>, vector<8x128xf32> -> vector<8x128xf32>
      %c0_15 = arith.constant 0 : index
      %c0_16 = arith.constant 0 : index
      %25 = vector.load %arg11[%c0_15, %c0_16] : memref<1x128xf32, #tpu.memory_space<vmem>>, vector<1x128xf32>
      %26 = vector.broadcast %25 : vector<1x128xf32> to vector<8x128xf32>
      %27 = arith.addf %24, %26 : vector<8x128xf32>
      %c0_17 = arith.constant 0 : index
      %c0_18 = arith.constant 0 : index
      %28 = vector.load %arg12[%c0_17, %c0_18] : memref<8x128xf32, #tpu.memory_space<vmem>>, vector<8x128xf32>
      tpu.vector_store %arg12[%c0_17, %c0_18], %27 {strides = array<i32>} : memref<8x128xf32, #tpu.memory_space<vmem>>, vector<8x128xf32>,
    } else {
    }
    return
  }
  func.func @transform_0(%arg0: i32, %arg1: i32) -> (i32, i32) {
    %c0_i32 = arith.constant 0 : i32
    %c0_i32_0 = arith.constant 0 : i32
    return %arg1, %c0_i32 : i32, i32
  }
  func.func @transform_1(%arg0: i32, %arg1: i32) -> (i32, i32) {
    %c0_i32 = arith.constant 0 : i32
    %c0_i32_0 = arith.constant 0 : i32
    %c0_i32_1 = arith.constant 0 : i32
    return %c0_i32, %c0_i32_0 : i32, i32
  }
  func.func @transform_2(%arg0: i32, %arg1: i32) -> (i32, i32) {
    %c0_i32 = arith.constant 0 : i32
    %c0_i32_0 = arith.constant 0 : i32
    return %arg1, %c0_i32 : i32, i32
  }
  func.func @transform_3(%arg0: i32, %arg1: i32) -> (i32, i32) {
    %c0_i32 = arith.constant 0 : i32
    %c0_i32_0 = arith.constant 0 : i32
    return %c0_i32, %arg1 : i32, i32
  }
  func.func @transform_4(%arg0: i32, %arg1: i32) -> (i32, i32) {
    %c0_i32 = arith.constant 0 : i32
    %c0_i32_0 = arith.constant 0 : i32
    %c0_i32_1 = arith.constant 0 : i32
    return %c0_i32, %c0_i32_0 : i32, i32
  }
  func.func @transform_5(%arg0: i32, %arg1: i32) -> (i32, i32) {
    %c0_i32 = arith.constant 0 : i32
    %c0_i32_0 = arith.constant 0 : i32
    %c0_i32_1 = arith.constant 0 : i32
    return %c0_i32, %c0_i32_0 : i32, i32
  }
  func.func @transform_6(%arg0: i32, %arg1: i32) -> (i32, i32) {
    %c0_i32 = arith.constant 0 : i32
    %c0_i32_0 = arith.constant 0 : i32
    %c0_i32_1 = arith.constant 0 : i32
    return %c0_i32, %c0_i32_0 : i32, i32
  }
  func.func @transform_7(%arg0: i32, %arg1: i32) -> (i32, i32) {
    %c0_i32 = arith.constant 0 : i32
    %c0_i32_0 = arith.constant 0 : i32
    %c0_i32_1 = arith.constant 0 : i32
    return %c0_i32, %c0_i32_0 : i32, i32
  }
  func.func @transform_8(%arg0: i32, %arg1: i32) -> (i32, i32) {
    %c0_i32 = arith.constant 0 : i32
    %c0_i32_0 = arith.constant 0 : i32
    %c0_i32_1 = arith.constant 0 : i32
    return %c0_i32, %c0_i32_0 : i32, i32
  }
  func.func @transform_9(%arg0: i32, %arg1: i32) -> (i32, i32) {
    %c0_i32 = arith.constant 0 : i32
    %c0_i32_0 = arith.constant 0 : i32
    %c0_i32_1 = arith.constant 0 : i32
    return %c0_i32, %c0_i32_0 : i32, i32
  }
  func.func @transform_10(%arg0: i32, %arg1: i32) -> (i32, i32) {
    %c0_i32 = arith.constant 0 : i32
    %c0_i32_0 = arith.constant 0 : i32
    %c0_i32_1 = arith.constant 0 : i32
    return %c0_i32, %c0_i32_0 : i32, i32
  }
}

</mosaic_0001>

<bundles_post_ra>
// kernel: gnn_forward.1
= control target key start
LH: loop header
LB: loop body
LE: loop exit
PB: predicated region body
PF: predicated region fallthrough
CT: control target
= control target key end

     0   :  { %s2112_s13 = smov 0   ;;  %s2114_s14 = smov 0   ;;  %s2541_s0 = inlined_call_operand.vmem [shape: s8[256,256], index: 0, kind: input, shape index: {}]   ;;  %s2542_s1 = inlined_call_operand.vmem [shape: bf16[256,128], index: 1, kind: input, shape index: {}]   ;;  %s2543_s2 = inlined_call_operand.vmem [shape: f32[256,1], index: 2, kind: input, shape index: {}]   ;;  %s2544_s3 = inlined_call_operand.vmem [shape: s32[1,256], index: 3, kind: input, shape index: {}]   ;;  %s2545_s4 = inlined_call_operand.vmem [shape: f32[1,128], index: 4, kind: input, shape index: {}]   ;;  %s2546_s5 = inlined_call_operand.vmem [shape: bf16[128,128], index: 5, kind: input, shape index: {}]   ;;  %s2547_s6 = inlined_call_operand.vmem [shape: f32[1,128], index: 6, kind: input, shape index: {}]   ;;  %s2548_s7 = inlined_call_operand.vmem [shape: f32[8,1], index: 7, kind: input, shape index: {}]   ;;  %s2549_s8 = inlined_call_operand.vmem [shape: bf16[128,128], index: 8, kind: input, shape index: {}]   ;;  %s2550_s9 = inlined_call_operand.vmem [shape: f32[1,128], index: 9, kind: input, shape index: {}]   ;;  %s2551_s10 = inlined_call_operand.vmem [shape: f32[8,128], index: 10, kind: output, shape index: {}]  }
   0x1   :  { %s2116_s15 = smov 0   ;;  %s2118_s16 = smov 0  }
   0x2   :  { %s2120_s17 = smov 0  }
   0x3 LB: > { %s29_s18 = sadd.s32 1, %s2042_s15  ;;  %s32_s19 = sadd.s32 1, %s2046_s16  ;;  %s2050_s17 = sphi %s2120_s17, %s20_s17   ;;  %s2046_s16 = sphi %s2118_s16, %s2556_s16   ;;  %s2042_s15 = sphi %s2116_s15, %s2555_s15   ;;  %s2038_s14 = sphi %s2114_s14, %s2554_s14   ;;  %s2034_s13 = sphi %s2112_s13, %s2553_s13  }
   0x4   : > { %p30_p0 = scmp.ge.s32.totalorder %s29_s18, 2  ;;  %p1614_p1 = scmp.ge.s32.totalorder %s2050_s17, 1 }
   0x5   : > { %p340_p2 = scmp.lt.s32.totalorder %s2050_s17, 5 }
   0x6   : > { %s2558_s18 = smov (%p30_p0, %s29_s18), 0  ;;  %s2560_s19 = smov (!%p30_p0, %s32_s19), %s2046_s16 }
   0x7   : > { %p341_p3 = pnand %p1614_p1, %p340_p2  ;;  %p34_p4 = scmp.ge.s32.totalorder %s2560_s19, 2 }
   0x8   : > { %s1615_s20 = sshll.u32 (!%p341_p3), %s2034_s13, 2  ;;  %s1618_s21 = sshll.u32 (!%p341_p3), %s2034_s13, 4 }
   0x9   : > { %s2562_s19 = smov (%p34_p4, %s2560_s19), 0  ;;  %344 = sbr.rel (%p341_p3) target bundleno = 1122 (0x462), region = 60 }
   0xa   : > { %p383_p5 = scmp.lt.s32.totalorder (!%p341_p3), %s1615_s20, 7  ;;  %p390_p6 = scmp.lt.s32.totalorder (!%p341_p3), %s1618_s21, 31 }
   0xb   : > { %p395_p7 = scmp.lt.s32.totalorder (!%p341_p3), %s2034_s13, 1  ;;  %p486_p8 = scmp.eq.s32.totalorder (!%p341_p3), %s2038_s14, 0 }
   0xc   : > { %p487_p9 = scmp.eq.s32.totalorder (!%p341_p3), %s2034_s13, 0 }
   0xe   : > { %s2564_s20 = smov (!%p383_p5, %s1615_s20), 7  ;;  %s2566_s21 = smov (!%p390_p6, %s1618_s21), 31 }
   0xf   : > { %s1820_s22 = sshll.u32 %s2564_s20, 4  ;;  %s1619_s26 = sshll.u32 %s2566_s21, 3 }
  0x10   : > { %s387_s25 = scalar_lea.vmem %s2541_s0, %s1820_s22  ;;  %s2157_s29 = scalar_lea.vmem %s2543_s2, %s1619_s26 }
  0x11   : > { %v398_v0 = vld [vmem:[%s387_s25] sm:$0xff]  ;;  %v399_v1 = vld [vmem:[%s387_s25 + $0x8] sm:$0xff]  ;;  %v400_v2 = vld [vmem:[%s387_s25 + $0x10] sm:$0xff]  ;;  %p2159_p10 = pnand %p487_p9, %p486_p8 }
  0x12   : > { %s2166_s11 = scalar_select %p395_p7, %s2034_s13, 1  ;;  %v401_v3 = vld [vmem:[%s387_s25 + $0x18] sm:$0xff]  ;;  %v406_v4 = vunpack.c.0.s8 %v398_v0  ;;  %v407_v5 = vunpack.c.0.s8 %v399_v1  ;;  %v408_v6 = vunpack.c.1.s8 %v398_v0  ;;  %v409_v7 = vunpack.c.1.s8 %v399_v1  ;;  %v402_v8 = vld [vmem:[%s387_s25 + $0x20] sm:$0xff]  ;;  %v403_v9 = vld [vmem:[%s387_s25 + $0x28] sm:$0xff] }
  0x13   : > { %v410_v10 = vunpack.c.2.s8 %v398_v0  ;;  %v411_v11 = vunpack.c.2.s8 %v399_v1  ;;  %v412_v12 = vunpack.c.3.s8 %v398_v0  ;;  %v413_v13 = vunpack.c.3.s8 %v399_v1  ;;  %v404_v18 = vld [vmem:[%s387_s25 + $0x30] sm:$0xff]  ;;  %v405_v19 = vld [vmem:[%s387_s25 + $0x38] sm:$0xff] }
  0x14   : > { %s397_s21 = scalar_lea.vmem %s2544_s3, %s2166_s11  ;;  %v414_v14 = vunpack.c.0.s8 %v400_v2  ;;  %v415_v15 = vunpack.c.0.s8 %v401_v3  ;;  %v416_v16 = vunpack.c.1.s8 %v400_v2  ;;  %v417_v17 = vunpack.c.1.s8 %v401_v3 }
  0x15   : > { %v418_v20 = vunpack.c.2.s8 %v400_v2  ;;  %v419_v21 = vunpack.c.2.s8 %v401_v3  ;;  %v420_v22 = vunpack.c.3.s8 %v400_v2  ;;  %v421_v23 = vunpack.c.3.s8 %v401_v3 }
  0x16   : > { %v422_v24 = vunpack.c.0.s8 %v402_v8  ;;  %v423_v25 = vunpack.c.0.s8 %v403_v9  ;;  %v424_v26 = vunpack.c.1.s8 %v402_v8  ;;  %v425_v27 = vunpack.c.1.s8 %v403_v9 }
  0x17   : > { %v426_v28 = vunpack.c.2.s8 %v402_v8  ;;  %v427_v29 = vunpack.c.2.s8 %v403_v9  ;;  %v428_v30 = vunpack.c.3.s8 %v402_v8  ;;  %v429_v31 = vunpack.c.3.s8 %v403_v9 }
  0x18   : > { %v430_v32 = vunpack.c.0.s8 %v404_v18  ;;  %v431_v33 = vunpack.c.0.s8 %v405_v19  ;;  %v432_v34 = vunpack.c.1.s8 %v404_v18  ;;  %v433_v35 = vunpack.c.1.s8 %v405_v19 }
  0x19   : > { %v434_v36 = vunpack.c.2.s8 %v404_v18  ;;  %v435_v37 = vunpack.c.2.s8 %v405_v19  ;;  %v436_v38 = vunpack.c.3.s8 %v404_v18  ;;  %v437_v39 = vunpack.c.3.s8 %v405_v19 }
  0x1a   : > { %v438_v40 = vcvt.s32.f32 %v406_v4  ;;  %v439_v41 = vcvt.s32.f32 %v407_v5  ;;  %v440_v42 = vcvt.s32.f32 %v408_v6  ;;  %v441_v43 = vcvt.s32.f32 %v409_v7 }
  0x1b   : > { %v442_v44 = vcvt.s32.f32 %v410_v10  ;;  %v443_v45 = vcvt.s32.f32 %v411_v11  ;;  %v444_v46 = vcvt.s32.f32 %v412_v12  ;;  %v445_v47 = vcvt.s32.f32 %v413_v13 }
  0x1c   : > { %v446_v48 = vcvt.s32.f32 %v414_v14  ;;  %v447_v49 = vcvt.s32.f32 %v415_v15  ;;  %v448_v50 = vcvt.s32.f32 %v416_v16  ;;  %v449_v51 = vcvt.s32.f32 %v417_v17 }
  0x1d   : > { %v450_v52 = vcvt.s32.f32 %v418_v20  ;;  %v451_v53 = vcvt.s32.f32 %v419_v21  ;;  %v452_v54 = vcvt.s32.f32 %v420_v22  ;;  %v453_v55 = vcvt.s32.f32 %v421_v23 }
  0x1e   : > { %v454_v56 = vcvt.s32.f32 %v422_v24  ;;  %v455_v57 = vcvt.s32.f32 %v423_v25  ;;  %v456_v58 = vcvt.s32.f32 %v424_v26  ;;  %v457_v59 = vcvt.s32.f32 %v425_v27 }
  0x1f   : > { %v458_v60 = vcvt.s32.f32 %v426_v28  ;;  %v459_v61 = vcvt.s32.f32 %v427_v29  ;;  %v460_v62 = vcvt.s32.f32 %v428_v30  ;;  %v461_v63 = vcvt.s32.f32 %v429_v31 }
  0x20   : > { %v462_v0 = vcvt.s32.f32 %v430_v32  ;;  %v463_v1 = vcvt.s32.f32 %v431_v33  ;;  %v464_v2 = vcvt.s32.f32 %v432_v34  ;;  %v465_v3 = vcvt.s32.f32 %v433_v35 }
  0x21   : > { %v466_v4 = vcvt.s32.f32 %v434_v36  ;;  %v467_v5 = vcvt.s32.f32 %v435_v37  ;;  %v468_v6 = vcvt.s32.f32 %v436_v38  ;;  %v469_v7 = vcvt.s32.f32 %v437_v39  ;;  %491 = sbr.rel (%p2159_p10) target bundleno = 40 (0x28), region = 64 }
  0x22   : > { %v2172_v8 = vpack.c.bf16 %v440_v42, %v438_v40  ;;  %v2174_v9 = vpack.c.bf16 %v441_v43, %v439_v41  ;;  %v2176_v10 = vpack.c.bf16 %v444_v46, %v442_v44  ;;  %v2178_v11 = vpack.c.bf16 %v445_v47, %v443_v45 }
  0x23   : > { %v2180_v12 = vpack.c.bf16 %v448_v50, %v446_v48  ;;  %v2182_v13 = vpack.c.bf16 %v449_v51, %v447_v49  ;;  %v2184_v14 = vpack.c.bf16 %v452_v54, %v450_v52  ;;  %v2186_v15 = vpack.c.bf16 %v453_v55, %v451_v53 }
  0x24   : > { %v2188_v16 = vpack.c.bf16 %v456_v58, %v454_v56  ;;  %v2190_v17 = vpack.c.bf16 %v457_v59, %v455_v57  ;;  %v2192_v18 = vpack.c.bf16 %v460_v62, %v458_v60  ;;  %v2194_v19 = vpack.c.bf16 %v461_v63, %v459_v61 }
  0x25   : > { %v2196_v20 = vpack.c.bf16 %v464_v2, %v462_v0  ;;  %v2198_v21 = vpack.c.bf16 %v465_v3, %v463_v1  ;;  %v2200_v22 = vpack.c.bf16 %v468_v6, %v466_v4  ;;  %v2202_v23 = vpack.c.bf16 %v469_v7, %v467_v5 }
  0x26   : > { %v2052_v24 = vmov 0.0  }
  0x27   : > { %492 = vst [vmem:[#allocation3] sm:$0xff] %v2052_v24 }
  0x28 PF: > { %p1620_p11 = scmp.ne.s32.totalorder %s2038_s14, 0 }
  0x29   : > { %s1717_s22 = sshll.u32 (!%p1620_p11), %s2034_s13, 7 }
  0x2a   : > { %495 = sbr.rel (%p1620_p11) target bundleno = 450 (0x1c2), region = 68  ;;  %s1024_s23 = sshra.s32 (!%p1620_p11), %s1717_s22, 3 }
  0x2b   : > { %s1718_s24 = sshll.u32 (!%p1620_p11), %s1024_s23, 2 }
  0x2c   : > { %s2380_s25 = scalar_lea.vmem (!%p1620_p11), [#allocation2], %s1718_s24 }
  0x2f   : > { %v1828_v25 = vld [vmem:[%s2542_s1 + $0x38] sm:$0xff]  ;;  %v722_v27 = vld [vmem:[%s2157_s29] sm:$0xff]  ;;  %v2053_v28 = vmov 0   ;;  %v1827_v29 = vld [vmem:[%s2542_s1 + $0x30] sm:$0xff] }
  0x30   : > { %v1836_v26 = vld [vmem:[%s2542_s1 + $0x78] sm:$0xff]  ;;  %2001 = vset.pattern.permute.xlu0 %v2053_v28  ;;  %2002 = vset.pattern.permute.xlu1 %v2053_v28  ;;  %v1835_v30 = vld [vmem:[%s2542_s1 + $0x70] sm:$0xff]  ;;  %v1826_v32 = vld [vmem:[%s2542_s1 + $0x28] sm:$0xff] }
  0x31   : > { %624 = vmatpush.bf16.msra.mxu0 %v1828_v25  ;;  %1916 = vmatpush.bf16.msra.mxu3 %v1828_v25  ;;  %v724_v31 = vld [vmem:[%s2157_s29 + $0x10] sm:$0xff]  ;;  %v1834_v33 = vld [vmem:[%s2542_s1 + $0x68] sm:$0xff]  ;;  %v1825_v35 = vld [vmem:[%s2542_s1 + $0x20] sm:$0xff] }
  0x32   : > { %673 = vmatpush.bf16.msra.mxu1 %v1836_v26  ;;  %740 = vperm.xlu0 %2001, %v722_v27   ;;  %v723_v34 = vld [vmem:[%s2157_s29 + $0x8] sm:$0xff]  ;;  %v1833_v36 = vld [vmem:[%s2542_s1 + $0x60] sm:$0xff]  ;;  %v725_v37 = vld [vmem:[%s2157_s29 + $0x18] sm:$0xff] }
  0x33   : > { %2003 = vset.pattern.permute.xlu2 %v2053_v28  ;;  %750 = vperm.xlu1 %2002, %v724_v31   ;;  %v1824_v38 = vld [vmem:[%s2542_s1 + $0x18] sm:$0xff]  ;;  %v728_v40 = vld [vmem:[%s2157_s29 + $0x30] sm:$0xff]  ;;  %v1822_v44 = vld [vmem:[%s2542_s1 + $0x8] sm:$0xff] }
  0x34   : > { %v1832_v39 = vld [vmem:[%s2542_s1 + $0x58] sm:$0xff]  ;;  %v1823_v41 = vld [vmem:[%s2542_s1 + $0x10] sm:$0xff]  ;;  %v1830_v45 = vld [vmem:[%s2542_s1 + $0x48] sm:$0xff] }
  0x35   : > { %625 = vmatpush.bf16.msra.mxu0 %v1827_v29  ;;  %1917 = vmatpush.bf16.msra.mxu3 %v1827_v29  ;;  %v1831_v42 = vld [vmem:[%s2542_s1 + $0x50] sm:$0xff]  ;;  %v729_v43 = vld [vmem:[%s2157_s29 + $0x38] sm:$0xff]  ;;  %v731_v46 = vld [vmem:[%s2157_s29 + $0x48] sm:$0xff] }
  0x36   : > { %674 = vmatpush.bf16.msra.mxu1 %v1835_v30  ;;  %v1821_v47 = vld [vmem:[%s2542_s1] sm:$0xff]  ;;  %v732_v50 = vld [vmem:[%s2157_s29 + $0x50] sm:$0xff]  ;;  %v733_v52 = vld [vmem:[%s2157_s29 + $0x58] sm:$0xff] }
  0x37   : > { %v1829_v48 = vld [vmem:[%s2542_s1 + $0x40] sm:$0xff]  ;;  %v737_v53 = vld [vmem:[%s2157_s29 + $0x78] sm:$0xff]  ;;  %v727_v54 = vld [vmem:[%s2157_s29 + $0x28] sm:$0xff] }
  0x38   : > { %v734_v49 = vld [vmem:[%s2157_s29 + $0x60] sm:$0xff]  ;;  %v735_v56 = vld [vmem:[%s2157_s29 + $0x68] sm:$0xff]  ;;  %v736_v57 = vld [vmem:[%s2157_s29 + $0x70] sm:$0xff] }
  0x39   : > { %626 = vmatpush.bf16.msra.mxu0 %v1826_v32  ;;  %1918 = vmatpush.bf16.msra.mxu3 %v1826_v32  ;;  %v726_v51 = vld [vmem:[%s2157_s29 + $0x20] sm:$0xff]  ;;  %v1844_v58 = vld [vmem:[%s2546_s5 + $0x38] sm:$0xff]  ;;  %v1843_v59 = vld [vmem:[%s2546_s5 + $0x30] sm:$0xff] }
  0x3a   : > { %675 = vmatpush.bf16.msra.mxu1 %v1834_v33  ;;  %745 = vperm.xlu0 %2001, %v723_v34   ;;  %v730_v55 = vld [vmem:[%s2157_s29 + $0x40] sm:$0xff]  ;;  %v1842_v60 = vld [vmem:[%s2546_s5 + $0x28] sm:$0xff]  ;;  %v1840_v62 = vld [vmem:[%s2546_s5 + $0x18] sm:$0xff] }
  0x3b   : > { %755 = vperm.xlu1 %2002, %v725_v37   ;;  %760 = vperm.xlu2 %2003, %v726_v51   ;;  %v1841_v61 = vld [vmem:[%s2546_s5 + $0x20] sm:$0xff]  ;;  %v1839_v63 = vld [vmem:[%s2546_s5 + $0x10] sm:$0xff]  ;;  %v1838_v0 = vld [vmem:[%s2546_s5 + $0x8] sm:$0xff] }
  0x3c   : > { %942 = vmatpush.bf16.msra.mxu2 %v1844_v58  ;;  %v1837_v1 = vld [vmem:[%s2546_s5] sm:$0xff] }
  0x3d   : > { %627 = vmatpush.bf16.msra.mxu0 %v1825_v35  ;;  %1919 = vmatpush.bf16.msra.mxu3 %v1825_v35  ;;  %v2317_v25 = vld [vmem:[%s2545_s4] ss:$0 sm:$0xff] }
  0x3e   : > { %676 = vmatpush.bf16.msra.mxu1 %v1833_v36 }
  0x40   : > { %943 = vmatpush.bf16.msra.mxu2 %v1843_v59 }
  0x41   : > { %628 = vmatpush.bf16.msra.mxu0 %v1824_v38  ;;  %1920 = vmatpush.bf16.msra.mxu3 %v1824_v38 }
  0x42   : > { %677 = vmatpush.bf16.msra.mxu1 %v1832_v39  ;;  %770 = vperm.xlu0 %2001, %v728_v40  }
  0x43   : > { %775 = vperm.xlu1 %2002, %v729_v43   ;;  %765 = vperm.xlu2 %2003, %v727_v54  }
  0x44   : > { %944 = vmatpush.bf16.msra.mxu2 %v1842_v60 }
  0x45   : > { %629 = vmatpush.bf16.msra.mxu0 %v1823_v41  ;;  %1921 = vmatpush.bf16.msra.mxu3 %v1823_v41 }
  0x46   : > { %678 = vmatpush.bf16.msra.mxu1 %v1831_v42 }
  0x48   : > { %945 = vmatpush.bf16.msra.mxu2 %v1841_v61 }
  0x49   : > { %630 = vmatpush.bf16.msra.mxu0 %v1822_v44  ;;  %1922 = vmatpush.bf16.msra.mxu3 %v1822_v44 }
  0x4a   : > { %679 = vmatpush.bf16.msra.mxu1 %v1830_v45  ;;  %785 = vperm.xlu0 %2001, %v731_v46  }
  0x4b   : > { %800 = vperm.xlu1 %2002, %v734_v49   ;;  %780 = vperm.xlu2 %2003, %v730_v55  }
  0x4c   : > { %946 = vmatpush.bf16.msra.mxu2 %v1840_v62 }
  0x4d   : > { %631 = vmatpush.bf16.msra.mxu0 %v1821_v47  ;;  %1923 = vmatpush.bf16.msra.mxu3 %v1821_v47 }
  0x4e   : > { %680 = vmatpush.bf16.msra.mxu1 %v1829_v48 }
  0x50   : > { %632 = vmatmul.bf16.vlgmr.msra.gmra.mxu0 %v2172_v8  ;;  %662 = vmatmul.bf16.vlgmr.msra.gmra.mxu3 %v2196_v20 }
  0x51   : > { %1924 = vmatpush.bf16.msrb.mxu3 %v1836_v26  ;;  %681 = vmatmul.bf16.vlgmr.msra.gmra.mxu1 %v2174_v9 }
  0x52   : > { %790 = vperm.xlu0 %2001, %v732_v50   ;;  %947 = vmatpush.bf16.msra.mxu2 %v1839_v63 }
  0x53   : > { %795 = vperm.xlu1 %2002, %v733_v52   ;;  %805 = vperm.xlu2 %2003, %v735_v56  }
  0x55   : > { %1925 = vmatpush.bf16.msrb.mxu3 %v1835_v30 }
  0x56   : > { %948 = vmatpush.bf16.msra.mxu2 %v1838_v0 }
  0x59   : > { %1926 = vmatpush.bf16.msrb.mxu3 %v1834_v33 }
  0x5a   : > { %815 = vperm.xlu0 %2001, %v737_v53   ;;  %949 = vmatpush.bf16.msra.mxu2 %v1837_v1 }
  0x5b   : > { %810 = vperm.xlu2 %2003, %v736_v57  }
  0x5d   : > { %1927 = vmatpush.bf16.msrb.mxu3 %v1833_v36 }
  0x60   : > { %637 = vmatmul.bf16.gmra.mxu0 %v2176_v10  ;;  %667 = vmatmul.bf16.gmra.mxu3 %v2200_v22 }
  0x61   : > { %1928 = vmatpush.bf16.msrb.mxu3 %v1832_v39  ;;  %686 = vmatmul.bf16.gmra.mxu1 %v2178_v11 }
  0x65   : > { %1929 = vmatpush.bf16.msrb.mxu3 %v1831_v42 }
  0x69   : > { %1930 = vmatpush.bf16.msrb.mxu3 %v1830_v45 }
  0x6d   : > { %1931 = vmatpush.bf16.msrb.mxu3 %v1829_v48 }
  0x70   : > { %642 = vmatmul.bf16.gmra.mxu0 %v2180_v12  ;;  %711 = vmatmul.bf16.vlgmr.msrb.gmra.mxu3 %v2198_v21 }
  0x71   : > { %691 = vmatmul.bf16.gmra.mxu1 %v2182_v13  ;;  %1932 = vmatpush.bf16.msra.mxu3 %v1844_v58 }
  0x75   : > { %1933 = vmatpush.bf16.msra.mxu3 %v1843_v59 }
  0x79   : > { %1934 = vmatpush.bf16.msra.mxu3 %v1842_v60 }
  0x7d   : > { %1935 = vmatpush.bf16.msra.mxu3 %v1841_v61 }
  0x80   : > { %647 = vmatmul.bf16.gmra.mxu0 %v2184_v14  ;;  %716 = vmatmul.bf16.gmra.mxu3 %v2202_v23 }
  0x81   : > { %696 = vmatmul.bf16.gmra.mxu1 %v2186_v15  ;;  %1936 = vmatpush.bf16.msra.mxu3 %v1840_v62 }
  0x85   : > { %1937 = vmatpush.bf16.msra.mxu3 %v1839_v63 }
  0x89   : > { %1938 = vmatpush.bf16.msra.mxu3 %v1838_v0 }
  0x8d   : > { %1939 = vmatpush.bf16.msra.mxu3 %v1837_v1 }
  0x90   : > { %652 = vmatmul.bf16.gmra.mxu0 %v2188_v16 }
  0x91   : > { %701 = vmatmul.bf16.gmra.mxu1 %v2190_v17 }
  0x95   : > { %v2326_v38 = vpop.permute.xlu2 %760 }
  0x9d   : > { %v2331_v47 = vpop.permute.xlu2 %765 }
  0xa0   : > { %657 = vmatmul.bf16.gmra.mxu0 %v2192_v18 }
  0xa1   : > { %706 = vmatmul.bf16.gmra.mxu1 %v2194_v19 }
  0xa4   : > { %v2311_v3 = vpop.permute.xlu0 %740 }
  0xa5   : > { %v2323_v31 = vpop.permute.xlu1 %750  ;;  %v2340_v60 = vpop.permute.xlu2 %780 }
  0xac   : > { %v2319_v28 = vpop.permute.xlu0 %745 }
  0xad   : > { %v2328_v42 = vpop.permute.xlu1 %755 }
  0xb4   : > { %v2336_v56 = vpop.permute.xlu0 %770 }
  0xb5   : > { %v2338_v57 = vpop.permute.xlu1 %775 }
  0xcd   : > { %v633_v2 = vpop.f32.mrf.mxu0 }
  0xce   : > { %v682_v4 = vpop.f32.mrf.mxu1 }
  0xcf   : > { %v683_v5 = vadd.f32 %v682_v4, %v633_v2  ;;  %v2343_v4 = vpop.permute.xlu0 %785 }
  0xd1   : > { %v818_v7 = vmul.f32 %v2311_v3, %v683_v5  ;;  %v2345_v5 = vpop.permute.xlu1 %800 }
  0xd3   : > { %v663_v6 = vpop.f32.mrf.mxu3  ;;  %v838_v30 = vadd.f32 %v2317_v25, %v818_v7 }
  0xd5   : > { %v635_v24 = vpop.f32.mrf.mxu0  ;;  %v854_v35 = vmax.f32 %v838_v30, 0.0 }
  0xd6   : > { %v684_v26 = vpop.f32.mrf.mxu1 }
  0xd7   : > { %v685_v27 = vadd.f32 %v684_v26, %v635_v24 }
  0xd9   : > { %v819_v29 = vmul.f32 %v2319_v28, %v685_v27 }
  0xdb   : > { %v665_v32 = vpop.f32.mrf.mxu3  ;;  %v839_v33 = vadd.f32 %v2317_v25, %v819_v29 }
  0xdd   : > { %v638_v34 = vpop.f32.mrf.mxu0  ;;  %v855_v36 = vmax.f32 %v839_v33, 0.0  ;;  %v2351_v33 = vpop.permute.xlu2 %805 }
  0xde   : > { %v687_v37 = vpop.f32.mrf.mxu1 }
  0xdf   : > { %v870_v39 = vpack.c.bf16 %v855_v36, %v854_v35  ;;  %v688_v40 = vadd.f32 %v687_v37, %v638_v34 }
  0xe1   : > { %950 = vmatmul.bf16.vlgmr.msra.gmra.mxu2 %v870_v39  ;;  %v820_v43 = vmul.f32 %v2323_v31, %v688_v40 }
  0xe3   : > { %v668_v41 = vpop.f32.mrf.mxu3  ;;  %v840_v49 = vadd.f32 %v2317_v25, %v820_v43 }
  0xe5   : > { %v640_v44 = vpop.f32.mrf.mxu0  ;;  %v856_v53 = vmax.f32 %v840_v49, 0.0 }
  0xe6   : > { %v689_v45 = vpop.f32.mrf.mxu1 }
  0xe7   : > { %v690_v46 = vadd.f32 %v689_v45, %v640_v44 }
  0xe9   : > { %v821_v48 = vmul.f32 %v2328_v42, %v690_v46 }
  0xeb   : > { %v670_v50 = vpop.f32.mrf.mxu3  ;;  %v841_v51 = vadd.f32 %v2317_v25, %v821_v48  ;;  %v2356_v48 = vpop.permute.xlu0 %790 }
  0xed   : > { %v643_v52 = vpop.f32.mrf.mxu0  ;;  %v857_v54 = vmax.f32 %v841_v51, 0.0 }
  0xee   : > { %v692_v55 = vpop.f32.mrf.mxu1 }
  0xef   : > { %v871_v58 = vpack.c.bf16 %v857_v54, %v856_v53  ;;  %v693_v59 = vadd.f32 %v692_v55, %v643_v52 }
  0xf1   : > { %955 = vmatmul.bf16.gmra.mxu2 %v871_v58  ;;  %v822_v62 = vmul.f32 %v2326_v38, %v693_v59  ;;  %v2359_v58 = vpop.permute.xlu2 %810 }
  0xf3   : > { %v712_v61 = vpop.f32.mrf.mxu3  ;;  %v842_v24 = vadd.f32 %v2317_v25, %v822_v62 }
  0xf4   : > { %v713_v0 = vadd.f32 %v712_v61, %v663_v6 }
  0xf5   : > { %v645_v63 = vpop.f32.mrf.mxu0  ;;  %v858_v6 = vmax.f32 %v842_v24, 0.0 }
  0xf6   : > { %v694_v1 = vpop.f32.mrf.mxu1  ;;  %v830_v26 = vmul.f32 %v2345_v5, %v713_v0 }
  0xf7   : > { %v695_v2 = vadd.f32 %v694_v1, %v645_v63 }
  0xf8   : > { %v850_v36 = vadd.f32 %v2317_v25, %v830_v26 }
  0xf9   : > { %v823_v7 = vmul.f32 %v2331_v47, %v695_v2  ;;  %v2365_v2 = vpop.permute.xlu0 %815 }
  0xfa   : > { %v866_v45 = vmax.f32 %v850_v36, 0.0 }
  0xfb   : > { %v714_v27 = vpop.f32.mrf.mxu3  ;;  %v843_v29 = vadd.f32 %v2317_v25, %v823_v7 }
  0xfc   : > { %v715_v30 = vadd.f32 %v714_v27, %v665_v32 }
  0xfd   : > { %v648_v34 = vpop.f32.mrf.mxu0  ;;  %v859_v35 = vmax.f32 %v843_v29, 0.0 }
  0xfe   : > { %v831_v37 = vmul.f32 %v2351_v33, %v715_v30  ;;  %v697_v39 = vpop.f32.mrf.mxu1 }
  0xff   : > { %v872_v40 = vpack.c.bf16 %v859_v35, %v858_v6  ;;  %v698_v44 = vadd.f32 %v697_v39, %v648_v34 }
 0x100   : > { %v851_v43 = vadd.f32 %v2317_v25, %v831_v37 }
 0x101   : > { %960 = vmatmul.bf16.gmra.mxu2 %v872_v40  ;;  %v824_v51 = vmul.f32 %v2336_v56, %v698_v44 }
 0x102   : > { %v867_v46 = vmax.f32 %v851_v43, 0.0 }
 0x103   : > { %v717_v32 = vpop.f32.mrf.mxu3  ;;  %v844_v61 = vadd.f32 %v2317_v25, %v824_v51 }
 0x104   : > { %v876_v49 = vpack.c.bf16 %v867_v46, %v866_v45  ;;  %v718_v53 = vadd.f32 %v717_v32, %v668_v41 }
 0x105   : > { %v650_v52 = vpop.f32.mrf.mxu0  ;;  %v860_v24 = vmax.f32 %v844_v61, 0.0 }
 0x106   : > { %v699_v54 = vpop.f32.mrf.mxu1  ;;  %980 = vmatmul.bf16.vlgmr.msra.gmra.mxu3 %v876_v49  ;;  %v832_v62 = vmul.f32 %v2359_v58, %v718_v53 }
 0x107   : > { %v700_v55 = vadd.f32 %v699_v54, %v650_v52 }
 0x108   : > { %v852_v29 = vadd.f32 %v2317_v25, %v832_v62 }
 0x109   : > { %v825_v59 = vmul.f32 %v2338_v57, %v700_v55 }
 0x10a   : > { %v868_v35 = vmax.f32 %v852_v29, 0.0 }
 0x10b   : > { %v719_v63 = vpop.f32.mrf.mxu3  ;;  %v845_v0 = vadd.f32 %v2317_v25, %v825_v59 }
 0x10c   : > { %v720_v1 = vadd.f32 %v719_v63, %v670_v50  ;;  %v796_v63 = vpop.permute.xlu1 %795 }
 0x10d   : > { %v653_v7 = vpop.f32.mrf.mxu0  ;;  %v861_v41 = vmax.f32 %v845_v0, 0.0 }
 0x10e   : > { %v833_v26 = vmul.f32 %v2365_v2, %v720_v1  ;;  %v702_v27 = vpop.f32.mrf.mxu1 }
 0x10f   : > { %v873_v30 = vpack.c.bf16 %v861_v41, %v860_v24  ;;  %v703_v6 = vadd.f32 %v702_v27, %v653_v7 }
 0x110   : > { %v853_v34 = vadd.f32 %v2317_v25, %v833_v26 }
 0x111   : > { %965 = vmatmul.bf16.gmra.mxu2 %v873_v30  ;;  %v826_v50 = vmul.f32 %v2340_v60, %v703_v6 }
 0x112   : > { %v869_v36 = vmax.f32 %v853_v34, 0.0 }
 0x113   : > { %v846_v45 = vadd.f32 %v2317_v25, %v826_v50 }
 0x114   : > { %v877_v37 = vpack.c.bf16 %v869_v36, %v868_v35 }
 0x115   : > { %v655_v39 = vpop.f32.mrf.mxu0  ;;  %v862_v49 = vmax.f32 %v846_v45, 0.0 }
 0x116   : > { %v704_v40 = vpop.f32.mrf.mxu1  ;;  %985 = vmatmul.bf16.gmra.mxu3 %v877_v37 }
 0x117   : > { %v705_v43 = vadd.f32 %v704_v40, %v655_v39 }
 0x119   : > { %v827_v44 = vmul.f32 %v2343_v4, %v705_v43 }
 0x11b   : > { %v847_v46 = vadd.f32 %v2317_v25, %v827_v44 }
 0x11d   : > { %v658_v32 = vpop.f32.mrf.mxu0  ;;  %v863_v51 = vmax.f32 %v847_v46, 0.0 }
 0x11e   : > { %v707_v52 = vpop.f32.mrf.mxu1 }
 0x11f   : > { %v874_v53 = vpack.c.bf16 %v863_v51, %v862_v49  ;;  %v708_v54 = vadd.f32 %v707_v52, %v658_v32 }
 0x121   : > { %970 = vmatmul.bf16.gmra.mxu2 %v874_v53  ;;  %v828_v55 = vmul.f32 %v2356_v48, %v708_v54 }
 0x123   : > { %v848_v1 = vadd.f32 %v2317_v25, %v828_v55 }
 0x125   : > { %v660_v59 = vpop.f32.mrf.mxu0  ;;  %v864_v24 = vmax.f32 %v848_v1, 0.0 }
 0x126   : > { %v709_v61 = vpop.f32.mrf.mxu1 }
 0x127   : > { %v710_v62 = vadd.f32 %v709_v61, %v660_v59 }
 0x129   : > { %v829_v0 = vmul.f32 %v796_v63, %v710_v62 }
 0x12b   : > { %v849_v7 = vadd.f32 %v2317_v25, %v829_v0 }
 0x12d   : > { %v865_v41 = vmax.f32 %v849_v7, 0.0 }
 0x12f   : > { %v875_v26 = vpack.c.bf16 %v865_v41, %v864_v24 }
 0x131   : > { %975 = vmatmul.bf16.gmra.mxu2 %v875_v26 }
 0x164   : > { %v951_v27 = vpop.f32.mrf.mxu2 }
 0x165   : > { %v991_v30 = vmul.f32 %v951_v27, %v2311_v3 }
 0x16c   : > { %v953_v29 = vpop.f32.mrf.mxu2 }
 0x16d   : > { %v992_v34 = vmul.f32 %v953_v29, %v2319_v28 }
 0x16f   : > { %v1872_v6 = vpack.c.bf16 %v992_v34, %v991_v30 }
 0x171   : > { %1873 = vst [vmem:[%s2380_s25] sm:$0xff] %v1872_v6  }
 0x174   : > { %v956_v25 = vpop.f32.mrf.mxu2 }
 0x175   : > { %v993_v36 = vmul.f32 %v956_v25, %v2323_v31 }
 0x17c   : > { %v958_v35 = vpop.f32.mrf.mxu2 }
 0x17d   : > { %v994_v37 = vmul.f32 %v958_v35, %v2328_v42 }
 0x17f   : > { %v1877_v50 = vpack.c.bf16 %v994_v37, %v993_v36 }
 0x181   : > { %1909 = vst [vmem:[%s2380_s25 + $0x8] sm:$0xff] %v1877_v50  }
 0x184   : > { %v961_v39 = vpop.f32.mrf.mxu2 }
 0x185   : > { %v995_v28 = vmul.f32 %v961_v39, %v2326_v38 }
 0x189   : > { %v981_v3 = vpop.f32.mrf.mxu3 }
 0x18a   : > { %v1003_v46 = vmul.f32 %v981_v3, %v2345_v5 }
 0x18c   : > { %v963_v40 = vpop.f32.mrf.mxu2 }
 0x18d   : > { %v996_v43 = vmul.f32 %v963_v40, %v2331_v47 }
 0x18f   : > { %v1882_v44 = vpack.c.bf16 %v996_v43, %v995_v28 }
 0x191   : > { %1910 = vst [vmem:[%s2380_s25 + $0x10] sm:$0xff] %v1882_v44   ;;  %v983_v45 = vpop.f32.mrf.mxu3 }
 0x192   : > { %v1004_v31 = vmul.f32 %v983_v45, %v2351_v33 }
 0x194   : > { %v1902_v32 = vpack.c.bf16 %v1004_v31, %v1003_v46  ;;  %v966_v42 = vpop.f32.mrf.mxu2 }
 0x195   : > { %v997_v52 = vmul.f32 %v966_v42, %v2336_v56 }
 0x196   : > { %1914 = vst [vmem:[%s2380_s25 + $0x30] sm:$0xff] %v1902_v32  }
 0x199   : > { %v986_v49 = vpop.f32.mrf.mxu3 }
 0x19a   : > { %v1005_v54 = vmul.f32 %v986_v49, %v2359_v58 }
 0x19c   : > { %v968_v51 = vpop.f32.mrf.mxu2 }
 0x19d   : > { %v998_v38 = vmul.f32 %v968_v51, %v2338_v57 }
 0x19f   : > { %v1887_v53 = vpack.c.bf16 %v998_v38, %v997_v52 }
 0x1a1   : > { %1911 = vst [vmem:[%s2380_s25 + $0x18] sm:$0xff] %v1887_v53   ;;  %v988_v47 = vpop.f32.mrf.mxu3 }
 0x1a2   : > { %v1006_v5 = vmul.f32 %v988_v47, %v2365_v2 }
 0x1a4   : > { %v1907_v55 = vpack.c.bf16 %v1006_v5, %v1005_v54  ;;  %v971_v33 = vpop.f32.mrf.mxu2 }
 0x1a5   : > { %v999_v61 = vmul.f32 %v971_v33, %v2340_v60 }
 0x1a6   : > { %1915 = vst [vmem:[%s2380_s25 + $0x38] sm:$0xff] %v1907_v55  }
 0x1ac   : > { %v973_v59 = vpop.f32.mrf.mxu2 }
 0x1ad   : > { %v1000_v62 = vmul.f32 %v973_v59, %v2343_v4 }
 0x1af   : > { %v1892_v0 = vpack.c.bf16 %v1000_v62, %v999_v61 }
 0x1b1   : > { %1912 = vst [vmem:[%s2380_s25 + $0x20] sm:$0xff] %v1892_v0  }
 0x1b4   : > { %v976_v56 = vpop.f32.mrf.mxu2 }
 0x1b5   : > { %v1001_v1 = vmul.f32 %v976_v56, %v2356_v48 }
 0x1bc   : > { %v978_v57 = vpop.f32.mrf.mxu2 }
 0x1bd   : > { %v1002_v7 = vmul.f32 %v978_v57, %v796_v63 }
 0x1bf   : > { %v1897_v24 = vpack.c.bf16 %v1002_v7, %v1001_v1 }
 0x1c1   : > { %1913 = vst [vmem:[%s2380_s25 + $0x28] sm:$0xff] %v1897_v24  }
 0x1c2 PF: > { %p1044_p12 = scmp.eq.s32.totalorder %s2038_s14, 1  ;;  %p1719_p13 = scmp.ne.s32.totalorder %s2038_s14, 1 }
 0x1c4   : > { %1047 = sbr.rel (%p1719_p13) target bundleno = 858 (0x35a), region = 72 }
 0x1c9   : > { %v1852_v58 = vld [vmem:[#allocation2 + $0x38] sm:$0xff]  ;;  %v2054_v4 = vmov 0   ;;  %v1851_v48 = vld [vmem:[#allocation2 + $0x30] sm:$0xff]  ;;  %v1850_v41 = vld [vmem:[#allocation2 + $0x28] sm:$0xff] }
 0x1ca   : > { %v1860_v60 = vld [vmem:[#allocation2 + $0x78] sm:$0xff]  ;;  %2005 = vset.pattern.permute.xlu0 %v2054_v4  ;;  %2007 = vset.pattern.permute.xlu2 %v2054_v4  ;;  %v1288_v2 = vld [vmem:[%s2157_s29 + $0x70] sm:$0xff]  ;;  %v1286_v26 = vld [vmem:[%s2157_s29 + $0x60] sm:$0xff] }
 0x1cb   : > { %1176 = vmatpush.bf16.msra.mxu0 %v1852_v58  ;;  %1940 = vmatpush.bf16.msra.mxu3 %v1852_v58  ;;  %v1859_v63 = vld [vmem:[#allocation2 + $0x70] sm:$0xff]  ;;  %v1858_v29 = vld [vmem:[#allocation2 + $0x68] sm:$0xff]  ;;  %v1289_v30 = vld [vmem:[%s2157_s29 + $0x78] sm:$0xff] }
 0x1cc   : > { %1225 = vmatpush.bf16.msra.mxu1 %v1860_v60  ;;  %1948 = vmatpush.bf16.msra.mxu2 %v1860_v60  ;;  %v1284_v27 = vld [vmem:[%s2157_s29 + $0x50] sm:$0xff]  ;;  %v1849_v34 = vld [vmem:[#allocation2 + $0x20] sm:$0xff]  ;;  %v1287_v25 = vld [vmem:[%s2157_s29 + $0x68] sm:$0xff] }
 0x1cd   : > { %1362 = vperm.xlu0 %2005, %v1288_v2   ;;  %2006 = vset.pattern.permute.xlu1 %v2054_v4  ;;  %v1857_v6 = vld [vmem:[#allocation2 + $0x60] sm:$0xff]  ;;  %v1285_v35 = vld [vmem:[%s2157_s29 + $0x58] sm:$0xff]  ;;  %v1847_v39 = vld [vmem:[#allocation2 + $0x10] sm:$0xff] }
 0x1ce   : > { %1352 = vperm.xlu1 %2006, %v1286_v26   ;;  %1342 = vperm.xlu2 %2007, %v1284_v27   ;;  %v1848_v36 = vld [vmem:[#allocation2 + $0x18] sm:$0xff]  ;;  %v1282_v50 = vld [vmem:[%s2157_s29 + $0x40] sm:$0xff]  ;;  %v1855_v3 = vld [vmem:[#allocation2 + $0x50] sm:$0xff] }
 0x1cf   : > { %1177 = vmatpush.bf16.msra.mxu0 %v1851_v48  ;;  %1941 = vmatpush.bf16.msra.mxu3 %v1851_v48  ;;  %v1856_v37 = vld [vmem:[#allocation2 + $0x58] sm:$0xff]  ;;  %v1283_v40 = vld [vmem:[%s2157_s29 + $0x48] sm:$0xff]  ;;  %v1280_v28 = vld [vmem:[%s2157_s29 + $0x30] sm:$0xff] }
 0x1d0   : > { %1226 = vmatpush.bf16.msra.mxu1 %v1859_v63  ;;  %1949 = vmatpush.bf16.msra.mxu2 %v1859_v63  ;;  %v1846_v43 = vld [vmem:[#allocation2 + $0x8] sm:$0xff]  ;;  %v1281_v45 = vld [vmem:[%s2157_s29 + $0x38] sm:$0xff]  ;;  %v1845_v46 = vld [vmem:[#allocation2] sm:$0xff] }
 0x1d1   : > { %v1854_v44 = vld [vmem:[#allocation2 + $0x48] sm:$0xff]  ;;  %v1853_v31 = vld [vmem:[#allocation2 + $0x40] sm:$0xff]  ;;  %v1276_v49 = vld [vmem:[%s2157_s29 + $0x10] sm:$0xff] }
 0x1d2   : > { %v1279_v32 = vld [vmem:[%s2157_s29 + $0x28] sm:$0xff]  ;;  %v1278_v42 = vld [vmem:[%s2157_s29 + $0x20] sm:$0xff]  ;;  %v1277_v51 = vld [vmem:[%s2157_s29 + $0x18] sm:$0xff] }
 0x1d3   : > { %1178 = vmatpush.bf16.msra.mxu0 %v1850_v41  ;;  %1942 = vmatpush.bf16.msra.mxu3 %v1850_v41  ;;  %v1274_v52 = vld [vmem:[%s2157_s29] sm:$0xff]  ;;  %v1275_v38 = vld [vmem:[%s2157_s29 + $0x8] sm:$0xff] }
 0x1d4   : > { %1227 = vmatpush.bf16.msra.mxu1 %v1858_v29  ;;  %1950 = vmatpush.bf16.msra.mxu2 %v1858_v29 }
 0x1d5   : > { %1367 = vperm.xlu0 %2005, %v1289_v30  }
 0x1d6   : > { %1357 = vperm.xlu1 %2006, %v1287_v25   ;;  %1347 = vperm.xlu2 %2007, %v1285_v35  }
 0x1d7   : > { %1179 = vmatpush.bf16.msra.mxu0 %v1849_v34  ;;  %1943 = vmatpush.bf16.msra.mxu3 %v1849_v34 }
 0x1d8   : > { %1228 = vmatpush.bf16.msra.mxu1 %v1857_v6  ;;  %1951 = vmatpush.bf16.msra.mxu2 %v1857_v6 }
 0x1db   : > { %1180 = vmatpush.bf16.msra.mxu0 %v1848_v36  ;;  %1944 = vmatpush.bf16.msra.mxu3 %v1848_v36 }
 0x1dc   : > { %1229 = vmatpush.bf16.msra.mxu1 %v1856_v37  ;;  %1952 = vmatpush.bf16.msra.mxu2 %v1856_v37 }
 0x1dd   : > { %1332 = vperm.xlu0 %2005, %v1282_v50  }
 0x1de   : > { %1337 = vperm.xlu1 %2006, %v1283_v40   ;;  %1322 = vperm.xlu2 %2007, %v1280_v28  }
 0x1df   : > { %1181 = vmatpush.bf16.msra.mxu0 %v1847_v39  ;;  %1945 = vmatpush.bf16.msra.mxu3 %v1847_v39 }
 0x1e0   : > { %1230 = vmatpush.bf16.msra.mxu1 %v1855_v3  ;;  %1953 = vmatpush.bf16.msra.mxu2 %v1855_v3 }
 0x1e3   : > { %1182 = vmatpush.bf16.msra.mxu0 %v1846_v43  ;;  %1946 = vmatpush.bf16.msra.mxu3 %v1846_v43 }
 0x1e4   : > { %1231 = vmatpush.bf16.msra.mxu1 %v1854_v44  ;;  %1954 = vmatpush.bf16.msra.mxu2 %v1854_v44 }
 0x1e5   : > { %1327 = vperm.xlu0 %2005, %v1281_v45  }
 0x1e6   : > { %1317 = vperm.xlu2 %2007, %v1279_v32   ;;  %1312 = vperm.xlu1 %2006, %v1278_v42  }
 0x1e7   : > { %1183 = vmatpush.bf16.msra.mxu0 %v1845_v46  ;;  %1947 = vmatpush.bf16.msra.mxu3 %v1845_v46 }
 0x1e8   : > { %1232 = vmatpush.bf16.msra.mxu1 %v1853_v31  ;;  %1955 = vmatpush.bf16.msra.mxu2 %v1853_v31 }
 0x1ea   : > { %1184 = vmatmul.bf16.vlgmr.msra.gmra.mxu0 %v2172_v8  ;;  %1209 = vmatmul.bf16.vlgmr.msra.gmra.mxu3 %v2192_v18 }
 0x1eb   : > { %1233 = vmatmul.bf16.vlgmr.msra.gmra.mxu1 %v2174_v9  ;;  %1258 = vmatmul.bf16.vlgmr.msra.gmra.mxu2 %v2194_v19 }
 0x1ed   : > { %1302 = vperm.xlu0 %2005, %v1276_v49  }
 0x1ee   : > { %1307 = vperm.xlu1 %2006, %v1277_v51   ;;  %1292 = vperm.xlu2 %2007, %v1274_v52  }
 0x1f5   : > { %1297 = vperm.xlu0 %2005, %v1275_v38  }
 0x1fa   : > { %1189 = vmatmul.bf16.gmra.mxu0 %v2176_v10  ;;  %1214 = vmatmul.bf16.gmra.mxu3 %v2196_v20 }
 0x1fb   : > { %1238 = vmatmul.bf16.gmra.mxu1 %v2178_v11  ;;  %1263 = vmatmul.bf16.gmra.mxu2 %v2198_v21 }
 0x20a   : > { %1194 = vmatmul.bf16.gmra.mxu0 %v2180_v12  ;;  %1219 = vmatmul.bf16.gmra.mxu3 %v2200_v22 }
 0x20b   : > { %1243 = vmatmul.bf16.gmra.mxu1 %v2182_v13  ;;  %1268 = vmatmul.bf16.gmra.mxu2 %v2202_v23  ;;  %v2450_v23 = vld [vmem:[%s2547_s6] ss:$0 sm:$0xff] }
 0x21a   : > { %1199 = vmatmul.bf16.gmra.mxu0 %v2184_v14 }
 0x21b   : > { %1248 = vmatmul.bf16.gmra.mxu1 %v2186_v15 }
 0x228   : > { %v1343_v9 = vpop.permute.xlu2 %1342 }
 0x22a   : > { %1204 = vmatmul.bf16.gmra.mxu0 %v2188_v16 }
 0x22b   : > { %1253 = vmatmul.bf16.gmra.mxu1 %v2190_v17 }
 0x230   : > { %v1348_v11 = vpop.permute.xlu2 %1347 }
 0x238   : > { %v2439_v12 = vpop.permute.xlu2 %1322 }
 0x23f   : > { %v1363_v8 = vpop.permute.xlu0 %1362 }
 0x240   : > { %v2443_v13 = vpop.permute.xlu2 %1317  ;;  %v1353_v29 = vpop.permute.xlu1 %1352 }
 0x247   : > { %v1368_v10 = vpop.permute.xlu0 %1367 }
 0x248   : > { %v1293_v16 = vpop.permute.xlu2 %1292  ;;  %v1358_v3 = vpop.permute.xlu1 %1357 }
 0x24f   : > { %v2437_v18 = vpop.permute.xlu0 %1332 }
 0x257   : > { %v2441_v19 = vpop.permute.xlu0 %1327 }
 0x25f   : > { %v2445_v20 = vpop.permute.xlu0 %1302 }
 0x267   : > { %v1185_v14 = vpop.f32.mrf.mxu0  ;;  %v1298_v5 = vpop.permute.xlu0 %1297 }
 0x268   : > { %v1234_v15 = vpop.f32.mrf.mxu1 }
 0x269   : > { %v1235_v21 = vadd.f32 %v1234_v15, %v1185_v14 }
 0x26b   : > { %v1370_v53 = vmul.f32 %v1293_v16, %v1235_v21 }
 0x26d   : > { %v1210_v22 = vpop.f32.mrf.mxu3  ;;  %v1390_v33 = vadd.f32 %v2450_v23, %v1370_v53 }
 0x26e   : > { %v1259_v17 = vpop.f32.mrf.mxu2 }
 0x26f   : > { %v1187_v47 = vpop.f32.mrf.mxu0  ;;  %v1406_v56 = vmax.f32 %v1390_v33, 0.0  ;;  %v1260_v40 = vadd.f32 %v1259_v17, %v1210_v22 }
 0x270   : > { %v1236_v54 = vpop.f32.mrf.mxu1 }
 0x271   : > { %v1237_v55 = vadd.f32 %v1236_v54, %v1187_v47  ;;  %v1380_v51 = vmul.f32 %v1343_v9, %v1260_v40  ;;  %v1338_v9 = vpop.permute.xlu1 %1337 }
 0x273   : > { %v1371_v59 = vmul.f32 %v1298_v5, %v1237_v55  ;;  %v1400_v16 = vadd.f32 %v2450_v23, %v1380_v51 }
 0x275   : > { %v1391_v61 = vadd.f32 %v2450_v23, %v1371_v59  ;;  %v1212_v62 = vpop.f32.mrf.mxu3 }
 0x276   : > { %v1261_v0 = vpop.f32.mrf.mxu2 }
 0x277   : > { %v1407_v57 = vmax.f32 %v1391_v61, 0.0  ;;  %v1190_v1 = vpop.f32.mrf.mxu0  ;;  %v1262_v28 = vadd.f32 %v1261_v0, %v1212_v62 }
 0x278   : > { %v1239_v7 = vpop.f32.mrf.mxu1 }
 0x279   : > { %v2454_v24 = vadd.f32 %v1239_v7, %v1190_v1  ;;  %v2456_v58 = vpack.c.bf16 %v1407_v57, %v1406_v56  ;;  %v1381_v52 = vmul.f32 %v1348_v11, %v1262_v28  ;;  %v1416_v11 = vmax.f32 %v1400_v16, 0.0  ;;  %v1313_v0 = vpop.permute.xlu1 %1312 }
 0x27b   : > { %v1401_v54 = vadd.f32 %v2450_v23, %v1381_v52  ;;  %v2055_v52 = vmov 1.0|1.0  }
 0x27d   : > { %v1215_v60 = vpop.f32.mrf.mxu3  ;;  %v1417_v55 = vmax.f32 %v1401_v54, 0.0 }
 0x27e   : > { %v1264_v4 = vpop.f32.mrf.mxu2 }
 0x27f   : > { %v2458_v48 = vpop.f32.mrf.mxu0  ;;  %v1265_v36 = vadd.f32 %v1264_v4, %v1215_v60  ;;  %v1427_v59 = vpack.c.bf16 %v1417_v55, %v1416_v11 }
 0x280   : > { %v2460_v2 = vpop.f32.mrf.mxu1 }
 0x281   : > { %v1382_v44 = vmul.f32 %v1353_v29, %v1265_v36  ;;  %v1242_v36 = vadd.f32 %v2460_v2, %v2458_v48  ;;  %v1372_v48 = vmul.f32 %v2445_v20, %v2454_v24  ;;  %v2009_v20 = vld [vmem:[%s397_s21] ss:$0 sm:$0xff] }
 0x285   : > { %v1217_v63 = vpop.f32.mrf.mxu3 }
 0x286   : > { %v1266_v41 = vpop.f32.mrf.mxu2 }
 0x287   : > { %v1195_v26 = vpop.f32.mrf.mxu0  ;;  %v1267_v37 = vadd.f32 %v1266_v41, %v1217_v63 }
 0x288   : > { %v1244_v27 = vpop.f32.mrf.mxu1 }
 0x289   : > { %v1383_v45 = vmul.f32 %v1358_v3, %v1267_v37  ;;  %v1245_v29 = vadd.f32 %v1244_v27, %v1195_v26 }
 0x28b   : > { %v1403_v15 = vadd.f32 %v2450_v23, %v1383_v45 }
 0x28d   : > { %v1220_v30 = vpop.f32.mrf.mxu3  ;;  %v1419_v47 = vmax.f32 %v1403_v15, 0.0 }
 0x28e   : > { %v1269_v34 = vpop.f32.mrf.mxu2 }
 0x28f   : > { %v1270_v6 = vadd.f32 %v1269_v34, %v1220_v30  ;;  %v1197_v25 = vpop.f32.mrf.mxu0 }
 0x290   : > { %v1246_v35 = vpop.f32.mrf.mxu1 }
 0x291   : > { %v1384_v50 = vmul.f32 %v1363_v8, %v1270_v6  ;;  %v1402_v8 = vadd.f32 %v2450_v23, %v1382_v44  ;;  %v1247_v4 = vadd.f32 %v1246_v35, %v1197_v25  ;;  %v1374_v25 = vmul.f32 %v1313_v0, %v1245_v29 }
 0x293   : > { %v1404_v32 = vadd.f32 %v2450_v23, %v1384_v50  ;;  %v1418_v53 = vmax.f32 %v1402_v8, 0.0  ;;  %v1375_v37 = vmul.f32 %v2443_v13, %v1247_v4  ;;  %v1394_v2 = vadd.f32 %v2450_v23, %v1374_v25 }
 0x295   : > { %v1222_v39 = vpop.f32.mrf.mxu3  ;;  %v1420_v14 = vmax.f32 %v1404_v32, 0.0  ;;  %v1395_v40 = vadd.f32 %v2450_v23, %v1375_v37  ;;  %v1410_v45 = vmax.f32 %v1394_v2, 0.0 }
 0x296   : > { %v1271_v43 = vpop.f32.mrf.mxu2 }
 0x297   : > { %v1272_v46 = vadd.f32 %v1271_v43, %v1222_v39  ;;  %v1200_v31 = vpop.f32.mrf.mxu0  ;;  %v1308_v39 = vpop.permute.xlu1 %1307  ;;  %v1411_v44 = vmax.f32 %v1395_v40, 0.0 }
 0x298   : > { %v1249_v42 = vpop.f32.mrf.mxu1  ;;  %v1373_v27 = vmul.f32 %v1308_v39, %v1242_v36 }
 0x299   : > { %v1385_v49 = vmul.f32 %v1368_v10, %v1272_v46  ;;  %v1428_v10 = vpack.c.bf16 %v1419_v47, %v1418_v53  ;;  %v1250_v57 = vadd.f32 %v1249_v42, %v1200_v31  ;;  %v1392_v46 = vadd.f32 %v2450_v23, %v1372_v48 }
 0x29a   : > { %v1393_v28 = vadd.f32 %v2450_v23, %v1373_v27  ;;  %v1430_v31 = vlaneseq  ;;  %v1424_v42 = vpack.c.bf16 %v1411_v44, %v1410_v45 }
 0x29b   : > { %v1405_v38 = vadd.f32 %v2450_v23, %v1385_v49  ;;  %v1376_v30 = vmul.f32 %v2439_v12, %v1250_v57  ;;  %v1408_v49 = vmax.f32 %v1392_v46, 0.0 }
 0x29c   : > { %v1409_v32 = vmax.f32 %v1393_v28, 0.0  ;;  %v1431_v51 = vshrl.u32 %v1430_v31, 7 }
 0x29d   : > { %v1421_v21 = vmax.f32 %v1405_v38, 0.0  ;;  %v1396_v26 = vadd.f32 %v2450_v23, %v1376_v30 }
 0x29e   : > { %v1423_v24 = vpack.c.bf16 %v1409_v32, %v1408_v49  ;;  %vm1434_vm0 = vcmp.eq.s32.totalorder %v1431_v51, %v2009_v20 }
 0x29f   : > { %v1202_v22 = vpop.f32.mrf.mxu0  ;;  %v1429_v17 = vpack.c.bf16 %v1421_v21, %v1420_v14  ;;  %v1412_v13 = vmax.f32 %v1396_v26, 0.0  ;;  %vm1784_vm1 = vmpackc.low %vm1434_vm0, %vm1434_vm0 }
 0x2a0   : > { %v1251_v5 = vpop.f32.mrf.mxu1 }
 0x2a1   : > { %1438 = vmatpush.bf16.msrb.mxu2 %v1429_v17  ;;  %v1252_v56 = vadd.f32 %v1251_v5, %v1202_v22 }
 0x2a3   : > { %v1377_v63 = vmul.f32 %v2441_v19, %v1252_v56 }
 0x2a5   : > { %1439 = vmatpush.bf16.msrb.mxu2 %v1428_v10 }
 0x2a7   : > { %v1205_v33 = vpop.f32.mrf.mxu0 }
 0x2a8   : > { %v1254_v61 = vpop.f32.mrf.mxu1 }
 0x2a9   : > { %1440 = vmatpush.bf16.msrb.mxu2 %v1427_v59  ;;  %v1255_v62 = vadd.f32 %v1254_v61, %v1205_v33 }
 0x2ab   : > { %v1378_v1 = vmul.f32 %v2437_v18, %v1255_v62  ;;  %v1397_v18 = vadd.f32 %v2450_v23, %v1377_v63 }
 0x2ad   : > { %v1398_v6 = vadd.f32 %v2450_v23, %v1378_v1  ;;  %v1413_v3 = vmax.f32 %v1397_v18, 0.0 }
 0x2af   : > { %v1207_v7 = vpop.f32.mrf.mxu0  ;;  %v1414_v35 = vmax.f32 %v1398_v6, 0.0  ;;  %v1425_v43 = vpack.c.bf16 %v1413_v3, %v1412_v13 }
 0x2b0   : > { %v1256_v60 = vpop.f32.mrf.mxu1 }
 0x2b1   : > { %v1257_v41 = vadd.f32 %v1256_v60, %v1207_v7 }
 0x2b3   : > { %v1379_v34 = vmul.f32 %v1338_v9, %v1257_v41 }
 0x2b5   : > { %v1399_v50 = vadd.f32 %v2450_v23, %v1379_v34  ;;  %v1437_v23 = vld [vmem:[#allocation3] sm:$0xff] }
 0x2b7   : > { %v1415_v19 = vmax.f32 %v1399_v50, 0.0 }
 0x2b9   : > { %v1426_v12 = vpack.c.bf16 %v1415_v19, %v1414_v35 }
 0x2bb   : > { %1441 = vmatpush.bf16.msrb.mxu2 %v1426_v12 }
 0x2bf   : > { %1442 = vmatpush.bf16.msrb.mxu2 %v1425_v43 }
 0x2c3   : > { %1443 = vmatpush.bf16.msrb.mxu2 %v1424_v42 }
 0x2c7   : > { %1444 = vmatpush.bf16.msrb.mxu2 %v1423_v24 }
 0x2cb   : > { %1445 = vmatpush.bf16.msrb.mxu2 %v2456_v58 }
 0x2ce   : > { %1785 = vmatmul.msk.bf16.vlgmr.msrb.gmra.mxu2 %vm1784_vm1, %v2055_v52 }
 0x351   : > { %v1447_v38 = vpop.f32.mrf.mxu2 }
 0x352   : > { %v1451_v14 = vadd.f32 %v1447_v38, %v1437_v23 }
 0x354   : > { %1452 = vst [vmem:[#allocation3] sm:$0xff] %v1451_v14 }
 0x359   : > { %v1449_v8 = vpop.f32.mrf.mxu2 }
 0x35a PF: > { %p1453_p0 = scmp.eq.s32.totalorder %s2034_s13, 1 }
 0x35c   : > { %p1454_p1 = pnand %p1453_p0, %p1044_p12 }
 0x35e   : > { %1457 = sbr.rel (%p1454_p1) target bundleno = 1122 (0x462), region = 76 }
 0x363   : > { %v1459_v15 = vld [vmem:[%s2548_s7] sm:$0xff]  ;;  %v1868_v58 = vld [vmem:[%s2549_s8 + $0x38] sm:$0xff]  ;;  %v2056_v21 = vmov 0   ;;  %v1867_v16 = vld [vmem:[%s2549_s8 + $0x30] sm:$0xff] }
 0x364   : > { %2010 = vset.pattern.permute.xlu0 %v2056_v21  ;;  %1535 = vmatpush.bf16.msra.mxu0 %v1868_v58  ;;  %v1866_v22 = vld [vmem:[%s2549_s8 + $0x28] sm:$0xff]  ;;  %v1865_v17 = vld [vmem:[%s2549_s8 + $0x20] sm:$0xff]  ;;  %v1864_v53 = vld [vmem:[%s2549_s8 + $0x18] sm:$0xff] }
 0x365   : > { %1462 = vperm.xlu0 %2010, %v1459_v15   ;;  %v1863_v47 = vld [vmem:[%s2549_s8 + $0x10] sm:$0xff]  ;;  %v1862_v54 = vld [vmem:[%s2549_s8 + $0x8] sm:$0xff]  ;;  %v1861_v5 = vld [vmem:[%s2549_s8] sm:$0xff] }
 0x366   : > { %v1458_v9 = vld [vmem:[#allocation3] sm:$0xff] }
 0x367   : > { %v2011_v33 = vld [vmem:[%s2550_s9] ss:$0 sm:$0xff] }
 0x368   : > { %1536 = vmatpush.bf16.msra.mxu0 %v1867_v16 }
 0x36c   : > { %1537 = vmatpush.bf16.msra.mxu0 %v1866_v22 }
 0x370   : > { %1538 = vmatpush.bf16.msra.mxu0 %v1865_v17 }
 0x374   : > { %1539 = vmatpush.bf16.msra.mxu0 %v1864_v53 }
 0x378   : > { %1540 = vmatpush.bf16.msra.mxu0 %v1863_v47 }
 0x37c   : > { %1541 = vmatpush.bf16.msra.mxu0 %v1862_v54 }
 0x380   : > { %1542 = vmatpush.bf16.msra.mxu0 %v1861_v5 }
 0x3d7   : > { %v1463_v10 = vpop.permute.xlu0 %1462 }
 0x3d8   : > { %v1465_v11 = vmul.f32 %v1463_v10, %v1458_v9 }
 0x3da   : > { %v1466_v55 = vpack.c.bf16 %v1465_v11, %v1465_v11 }
 0x3dc   : > { %1543 = vmatmul.bf16.vlgmr.msra.gmra.mxu0 %v1466_v55 }
 0x459   : > { %v1544_v59 = vpop.f32.mrf.mxu0 }
 0x45a   : > { %v1545_v61 = vadd.f32 %v2011_v33, %v1544_v59 }
 0x45c   : > { %1548 = vst [vmem:[%s2551_s10] sm:$0xff] %v1545_v61 }
 0x461   : > { %v1546_v62 = vpop.f32.mrf.mxu0 }
 0x462 PF: > { %s20_s17 = sadd.s32 1, %s2050_s17   ;;  %s2553_s13 = smov %s2042_s15 }
 0x463   : > { %p17_p2 = scmp.ge.s32.totalorder %s20_s17, 6   ;;  %s2554_s14 = smov %s2046_s16 }
 0x464   : > { %s2555_s15 = smov %s2558_s18  ;;  %s2556_s16 = smov %s2562_s19 }
 0x465   :  { %19 = sbr.rel (!%p17_p2) target bundleno = 3 (0x3), region = 109 }

</bundles_post_ra>
